<compile_context>
chip_gen: v6e
topology: v6e:2x2x1
jax: 0.10.0
libtpu: 0.0.40
codegen_flags: <defaults>
</compile_context>

<pallas_src>
import functools

import jax
import jax.numpy as jnp
from jax.experimental import pallas as pl
from jax.experimental.pallas import tpu as pltpu


def _round_up(a: int, b: int) -> int:
    return (a + b - 1) // b * b


_INV_SQRT2 = 0.7071067811865476

# Conservative soft budget for tile selection so configurations also fit v7x
# (64 MiB physical VMEM, 32 MiB default scoped limit) with headroom.
_VMEM_SOFT_BUDGET = 28 * 1024 * 1024


def _mlp_kernel(x_ref, w1_ref, b1_ref, w2_ref, b2_ref, o_ref, *, h_chunk):
    """One token tile: o = gelu(x @ w1 + b1) @ w2 + b2.

    x_ref : [TM, P_pad]    bf16  (pipelined over the token grid)
    w1_ref: [P_pad, H_pad] bf16  (grid-invariant, resident)
    b1_ref: [1, H_pad]     f32   (grid-invariant, resident)
    w2_ref: [H_pad, P_pad] bf16  (grid-invariant, resident)
    b2_ref: [1, P_pad]     f32   (grid-invariant, resident)
    o_ref : [TM, P_pad]    x.dtype
    """
    x = x_ref[...]
    h_total = w1_ref.shape[1]
    acc = None
    # Hidden dim in chunks: bounds the TM x H f32 intermediate (and its bf16
    # copy) in VMEM/vregs.  fc2 is linear in h, so per-chunk partial products
    # accumulate exactly; b2 is added once at the end.  For small models this
    # is a single iteration identical to the unchunked kernel.
    for h0 in range(0, h_total, h_chunk):
        h1 = h0 + h_chunk
        # fc1 chunk (bf16 MXU matmul, f32 accumulate) + bias
        h = jnp.dot(x, w1_ref[:, h0:h1], preferred_element_type=jnp.float32)
        h = h + b1_ref[:, h0:h1]
        # exact GELU (erf form), matches torch.nn.functional.gelu default
        h = 0.5 * h * (1.0 + jax.lax.erf(h * jnp.float32(_INV_SQRT2)))
        # dropout: eval-mode identity
        # TODO(synk): training-mode dropout (prng-masked) not emitted; inference only.
        # fc2 chunk (cast activations to bf16 for the MXU, f32 accumulate)
        part = jnp.dot(h.astype(w2_ref.dtype), w2_ref[h0:h1, :],
                       preferred_element_type=jnp.float32)
        acc = part if acc is None else acc + part
    o_ref[...] = (acc + b2_ref[...]).astype(o_ref.dtype)


def _resident_spec(block_shape, single_buffer):
    """BlockSpec for a grid-invariant (weight/bias) operand."""
    index_map = lambda i: (0, 0)
    if single_buffer:
        try:
            # Grid-invariant blocks gain nothing from double-buffering; a single
            # buffer halves their resident VMEM footprint.
            return pl.BlockSpec(block_shape, index_map,
                                pipeline_mode=pl.Buffered(1))
        except TypeError:
            pass  # older jax without pipeline_mode kwarg
    return pl.BlockSpec(block_shape, index_map)


def _vmem_estimate(tm, p_pad, h_pad, h_chunk, out_bytes, w_buffers):
    """Rough VMEM footprint (bytes) for one kernel configuration."""
    io = 2 * tm * p_pad * 2 + 2 * tm * p_pad * out_bytes          # x + out, 2-deep
    wgt = w_buffers * (2 * 2 * p_pad * h_pad + 4 * (h_pad + p_pad))  # bf16 w, f32 b
    scratch = tm * h_chunk * (4 + 2) + tm * p_pad * 4             # f32 h, bf16 h, f32 acc
    return io + wgt + scratch


@functools.partial(
    jax.jit,
    static_argnames=("block_m", "h_chunk_max", "single_buffer_weights"))
def _mlp_forward_impl(x, w1, b1, w2, b2, *, block_m, h_chunk_max,
                      single_buffer_weights):
    B, S, P = x.shape
    H = w1.shape[1]
    M = B * S

    # --- lane-dense padded feature dims --------------------------------------
    # NOTE(v6e/v7x): for real model sizes prefer H/P that are already multiples
    # of 256 so the 2x256x256 MXU is fully fed; padding is only to 128 here to
    # bound waste at small dims.  Zero padding is exact (padded rows/cols
    # contribute nothing and are sliced off below).
    P_pad = _round_up(P, 128)
    H_pad = _round_up(H, 128)

    # hidden chunk: largest multiple of 128 <= h_chunk_max that divides H_pad
    h_chunk = min(H_pad, _round_up(h_chunk_max, 128))
    while H_pad % h_chunk:
        h_chunk -= 128

    out_dtype = x.dtype
    out_bytes = x.dtype.itemsize
    w_buffers = 1 if single_buffer_weights else 2

    # --- token tiling ---------------------------------------------------------
    #  * >= 2 grid steps so the "parallel" axis can shard over v7x's 2 TCs
    #  * tm adapts to M so row-padding waste is bounded by < one tile
    #  * tm shrinks until the VMEM estimate fits the soft budget
    M8 = _round_up(M, 8)
    target_grid = max(2, pl.cdiv(M8, block_m))
    tm = _round_up(pl.cdiv(M8, target_grid), 8)
    while tm > 8 and _vmem_estimate(tm, P_pad, H_pad, h_chunk, out_bytes,
                                    w_buffers) > _VMEM_SOFT_BUDGET:
        tm = _round_up(pl.cdiv(tm, 2), 8)
    # TODO(synk): if resident weights alone exceed the budget (huge H*P), add a
    # hidden-dim grid axis with an f32 accumulator instead of resident w1/w2.
    grid_m = pl.cdiv(M8, tm)
    M_pad = grid_m * tm

    # --- padded operands (skipped when already aligned; fused under jit) ------
    x2d = x.reshape(M, P).astype(jnp.bfloat16)
    if M_pad != M or P_pad != P:
        x2d = jnp.pad(x2d, ((0, M_pad - M), (0, P_pad - P)))
    w1p = w1.astype(jnp.bfloat16)
    w2p = w2.astype(jnp.bfloat16)
    if P_pad != P or H_pad != H:
        w1p = jnp.pad(w1p, ((0, P_pad - P), (0, H_pad - H)))
        w2p = jnp.pad(w2p, ((0, H_pad - H), (0, P_pad - P)))
    b1p = b1.astype(jnp.float32)
    b2p = b2.astype(jnp.float32)
    if H_pad != H:
        b1p = jnp.pad(b1p, ((0, 0), (0, H_pad - H)))
    if P_pad != P:
        b2p = jnp.pad(b2p, ((0, 0), (0, P_pad - P)))

    est = _vmem_estimate(tm, P_pad, H_pad, h_chunk, out_bytes, w_buffers)
    vmem_limit = int(min(max(2 * est, 32 * 1024 * 1024), 60 * 1024 * 1024))

    kernel = functools.partial(_mlp_kernel, h_chunk=h_chunk)

    out2d = pl.pallas_call(
        kernel,
        out_shape=jax.ShapeDtypeStruct((M_pad, P_pad), out_dtype),
        grid_spec=pltpu.PrefetchScalarGridSpec(
            num_scalar_prefetch=0,
            grid=(grid_m,),
            in_specs=[
                pl.BlockSpec((tm, P_pad), lambda i: (i, 0)),            # x tile
                _resident_spec((P_pad, H_pad), single_buffer_weights),  # w1
                _resident_spec((1, H_pad), single_buffer_weights),      # b1
                _resident_spec((H_pad, P_pad), single_buffer_weights),  # w2
                _resident_spec((1, P_pad), single_buffer_weights),      # b2
            ],
            out_specs=pl.BlockSpec((tm, P_pad), lambda i: (i, 0)),
        ),
        compiler_params=pltpu.CompilerParams(
            dimension_semantics=("parallel",),
            vmem_limit_bytes=vmem_limit),
    )(x2d, w1p, b1p, w2p, b2p)

    if M_pad != M or P_pad != P:
        out2d = out2d[:M, :P]
    return out2d.reshape(B, S, P)


_single_buffer_ok = hasattr(pl, "Buffered")


def mlp_forward(x, w1, b1, w2, b2, *, block_m: int = 512,
                h_chunk_max: int = 2048):
    """x: [B, S, n_patches] -> [B, S, n_patches] (same dtype as x).

    w1: [n_patches, hidden]  (fc1.weight.T)   b1: [1, hidden]
    w2: [hidden, n_patches]  (fc2.weight.T)   b2: [1, n_patches]
    """
    global _single_buffer_ok
    try:
        return _mlp_forward_impl(x, w1, b1, w2, b2, block_m=block_m,
                                 h_chunk_max=h_chunk_max,
                                 single_buffer_weights=_single_buffer_ok)
    except Exception:
        if not _single_buffer_ok:
            raise
        # pl.Buffered(1) not supported by this jax/mosaic: fall back to the
        # default double-buffered invariant weights.
        _single_buffer_ok = False
        return _mlp_forward_impl(x, w1, b1, w2, b2, block_m=block_m,
                                 h_chunk_max=h_chunk_max,
                                 single_buffer_weights=False)


def _xavier_uniform(key, fan_in, fan_out, dtype=jnp.float32):
    # matches torch.nn.init.xavier_uniform_ on a (fan_out, fan_in) weight
    limit = jnp.sqrt(6.0 / (fan_in + fan_out)).astype(dtype)
    return jax.random.uniform(key, (fan_in, fan_out), dtype=dtype,
                              minval=-limit, maxval=limit)


if __name__ == "__main__":
    # small config consistent with the module:
    #   n_patches = 16, hidden_size = 32, tokens = B*S with B=2, S=8
    B, S = 2, 8
    n_patches, hidden_size = 16, 32

    key = jax.random.PRNGKey(0)
    kx, k1, k2, k3, k4 = jax.random.split(key, 5)

    x = jax.random.normal(kx, (B, S, n_patches), dtype=jnp.float32)

    # parameters (deterministic init mirroring _init_weights), stored transposed
    # as [in, out] so the kernel does x @ W directly
    w1 = _xavier_uniform(k1, n_patches, hidden_size)            # fc1.weight.T
    b1 = (1e-6 * jax.random.normal(k2, (1, hidden_size))).astype(jnp.float32)
    w2 = _xavier_uniform(k3, hidden_size, n_patches)            # fc2.weight.T
    b2 = (1e-6 * jax.random.normal(k4, (1, n_patches))).astype(jnp.float32)

    out = mlp_forward(x, w1, b1, w2, b2)
    jax.block_until_ready(out)
    assert out.shape == (B, S, n_patches) and out.dtype == x.dtype

    # --- reference 1: same bf16 input rounding, f32 math (tight tolerance) ----
    xb = x.reshape(-1, n_patches).astype(jnp.bfloat16).astype(jnp.float32)
    w1b = w1.astype(jnp.bfloat16).astype(jnp.float32)
    w2b = w2.astype(jnp.bfloat16).astype(jnp.float32)
    h = xb @ w1b + b1
    h = 0.5 * h * (1.0 + jax.lax.erf(h / jnp.sqrt(2.0)))
    h = h.astype(jnp.bfloat16).astype(jnp.float32)
    ref_bf16 = (h @ w2b + b2).reshape(B, S, n_patches)
    assert jnp.allclose(out, ref_bf16, atol=5e-3, rtol=5e-3), "bf16-matched ref mismatch"

    # --- reference 2: pure f32 torch-equivalent (loose tolerance, bf16 drift) --
    hf = x.reshape(-1, n_patches) @ w1 + b1
    hf = 0.5 * hf * (1.0 + jax.lax.erf(hf / jnp.sqrt(2.0)))
    ref_f32 = (hf @ w2 + b2).reshape(B, S, n_patches)
    assert jnp.allclose(out, ref_f32, atol=3e-2, rtol=3e-2), "f32 ref mismatch"

    print("KERNEL_OK")
</pallas_src>

<mosaic_0001>
module attributes {stable_mosaic.version = 11 : i64} {
  func.func @_mlp_kernel(%arg0: i32, %arg1: memref<8x128xbf16, #tpu.memory_space<vmem>>, %arg2: memref<128x128xbf16, #tpu.memory_space<vmem>>, %arg3: memref<1x128xf32, #tpu.memory_space<vmem>>, %arg4: memref<128x128xbf16, #tpu.memory_space<vmem>>, %arg5: memref<1x128xf32, #tpu.memory_space<vmem>>, %arg6: memref<8x128xf32, #tpu.memory_space<vmem>>) attributes {dimension_semantics = [#tpu.dimension_semantics<parallel>], iteration_bounds = array<i64: 2>, scalar_prefetch = 0 : i64, scratch_operands = 0 : i64, tpu.core_type = #tpu.core_type<tc>, window_params = [{transform_indices = @transform_0, window_bounds = array<i64: 8, 128>}, {pipeline_mode = #tpu.pipeline_mode<synchronous>, transform_indices = @transform_1, window_bounds = array<i64: 128, 128>}, {pipeline_mode = #tpu.pipeline_mode<synchronous>, transform_indices = @transform_2, window_bounds = array<i64: 1, 128>}, {pipeline_mode = #tpu.pipeline_mode<synchronous>, transform_indices = @transform_3, window_bounds = array<i64: 128, 128>}, {pipeline_mode = #tpu.pipeline_mode<synchronous>, transform_indices = @transform_4, window_bounds = array<i64: 1, 128>}, {transform_indices = @transform_5, window_bounds = array<i64: 8, 128>}]} {
    %c0 = arith.constant 0 : index
    %c0_0 = arith.constant 0 : index
    %0 = vector.load %arg1[%c0, %c0_0] : memref<8x128xbf16, #tpu.memory_space<vmem>>, vector<8x128xbf16>
    %c0_1 = arith.constant 0 : index
    %c0_2 = arith.constant 0 : index
    %1 = vector.load %arg2[%c0_1, %c0_2] : memref<128x128xbf16, #tpu.memory_space<vmem>>, vector<128x128xbf16>
    %cst = arith.constant dense<0.000000e+00> : vector<8x128xf32>
    %2 = tpu.matmul %0, %1, %cst {dimension_numbers = #tpu.dot_dimension_numbers<[1], [0], [0], [1], [0, 0, 1, 1], [], []>} : vector<8x128xbf16>, vector<128x128xbf16>, vector<8x128xf32> -> vector<8x128xf32>
    %c0_3 = arith.constant 0 : index
    %c0_4 = arith.constant 0 : index
    %3 = vector.load %arg3[%c0_3, %c0_4] : memref<1x128xf32, #tpu.memory_space<vmem>>, vector<1x128xf32>
    %4 = vector.broadcast %3 : vector<1x128xf32> to vector<8x128xf32>
    %5 = arith.addf %2, %4 : vector<8x128xf32>
    %cst_5 = arith.constant 5.000000e-01 : f32
    %6 = vector.broadcast %cst_5 : f32 to vector<8x128xf32>
    %7 = arith.mulf %6, %5 : vector<8x128xf32>
    %cst_6 = arith.constant 0.707106769 : f32
    %8 = vector.broadcast %cst_6 : f32 to vector<8x128xf32>
    %9 = arith.mulf %5, %8 : vector<8x128xf32>
    %10 = math.erf %9 : vector<8x128xf32>
    %cst_7 = arith.constant 1.000000e+00 : f32
    %11 = vector.broadcast %cst_7 : f32 to vector<8x128xf32>
    %12 = arith.addf %11, %10 : vector<8x128xf32>
    %13 = arith.mulf %7, %12 : vector<8x128xf32>
    %14 = arith.truncf %13 : vector<8x128xf32> to vector<8x128xbf16>
    %c0_8 = arith.constant 0 : index
    %c0_9 = arith.constant 0 : index
    %15 = vector.load %arg4[%c0_8, %c0_9] : memref<128x128xbf16, #tpu.memory_space<vmem>>, vector<128x128xbf16>
    %cst_10 = arith.constant dense<0.000000e+00> : vector<8x128xf32>
    %16 = tpu.matmul %14, %15, %cst_10 {dimension_numbers = #tpu.dot_dimension_numbers<[1], [0], [0], [1], [0, 0, 1, 1], [], []>} : vector<8x128xbf16>, vector<128x128xbf16>, vector<8x128xf32> -> vector<8x128xf32>
    %c0_11 = arith.constant 0 : index
    %c0_12 = arith.constant 0 : index
    %17 = vector.load %arg5[%c0_11, %c0_12] : memref<1x128xf32, #tpu.memory_space<vmem>>, vector<1x128xf32>
    %18 = vector.broadcast %17 : vector<1x128xf32> to vector<8x128xf32>
    %19 = arith.addf %16, %18 : vector<8x128xf32>
    %c0_13 = arith.constant 0 : index
    %c0_14 = arith.constant 0 : index
    %20 = vector.load %arg6[%c0_13, %c0_14] : memref<8x128xf32, #tpu.memory_space<vmem>>, vector<8x128xf32>
    tpu.vector_store %arg6[%c0_13, %c0_14], %19 {strides = array<i32>} : memref<8x128xf32, #tpu.memory_space<vmem>>, vector<8x128xf32>,
    return
  }
  func.func @transform_0(%arg0: i32) -> (i32, i32) {
    %c0_i32 = arith.constant 0 : i32
    %c0_i32_0 = arith.constant 0 : i32
    return %arg0, %c0_i32 : i32, i32
  }
  func.func @transform_1(%arg0: i32) -> (i32, i32) {
    %c0_i32 = arith.constant 0 : i32
    %c0_i32_0 = arith.constant 0 : i32
    %c0_i32_1 = arith.constant 0 : i32
    return %c0_i32, %c0_i32_0 : i32, i32
  }
  func.func @transform_2(%arg0: i32) -> (i32, i32) {
    %c0_i32 = arith.constant 0 : i32
    %c0_i32_0 = arith.constant 0 : i32
    %c0_i32_1 = arith.constant 0 : i32
    return %c0_i32, %c0_i32_0 : i32, i32
  }
  func.func @transform_3(%arg0: i32) -> (i32, i32) {
    %c0_i32 = arith.constant 0 : i32
    %c0_i32_0 = arith.constant 0 : i32
    %c0_i32_1 = arith.constant 0 : i32
    return %c0_i32, %c0_i32_0 : i32, i32
  }
  func.func @transform_4(%arg0: i32) -> (i32, i32) {
    %c0_i32 = arith.constant 0 : i32
    %c0_i32_0 = arith.constant 0 : i32
    %c0_i32_1 = arith.constant 0 : i32
    return %c0_i32, %c0_i32_0 : i32, i32
  }
  func.func @transform_5(%arg0: i32) -> (i32, i32) {
    %c0_i32 = arith.constant 0 : i32
    %c0_i32_0 = arith.constant 0 : i32
    return %arg0, %c0_i32 : i32, i32
  }
}

module attributes {stable_mosaic.version = 11 : i64} {
  func.func @_mlp_kernel(%arg0: i32, %arg1: memref<8x128xbf16, #tpu.memory_space<vmem>>, %arg2: memref<128x128xbf16, #tpu.memory_space<vmem>>, %arg3: memref<1x128xf32, #tpu.memory_space<vmem>>, %arg4: memref<128x128xbf16, #tpu.memory_space<vmem>>, %arg5: memref<1x128xf32, #tpu.memory_space<vmem>>, %arg6: memref<8x128xf32, #tpu.memory_space<vmem>>) attributes {dimension_semantics = [#tpu.dimension_semantics<parallel>], iteration_bounds = array<i64: 2>, scalar_prefetch = 0 : i64, scratch_operands = 0 : i64, tpu.core_type = #tpu.core_type<tc>, window_params = [{transform_indices = @transform_0, window_bounds = array<i64: 8, 128>}, {pipeline_mode = #tpu.pipeline_mode<synchronous>, transform_indices = @transform_1, window_bounds = array<i64: 128, 128>}, {pipeline_mode = #tpu.pipeline_mode<synchronous>, transform_indices = @transform_2, window_bounds = array<i64: 1, 128>}, {pipeline_mode = #tpu.pipeline_mode<synchronous>, transform_indices = @transform_3, window_bounds = array<i64: 128, 128>}, {pipeline_mode = #tpu.pipeline_mode<synchronous>, transform_indices = @transform_4, window_bounds = array<i64: 1, 128>}, {transform_indices = @transform_5, window_bounds = array<i64: 8, 128>}]} {
    %c0 = arith.constant 0 : index
    %c0_0 = arith.constant 0 : index
    %0 = vector.load %arg1[%c0, %c0_0] : memref<8x128xbf16, #tpu.memory_space<vmem>>, vector<8x128xbf16>
    %c0_1 = arith.constant 0 : index
    %c0_2 = arith.constant 0 : index
    %1 = vector.load %arg2[%c0_1, %c0_2] : memref<128x128xbf16, #tpu.memory_space<vmem>>, vector<128x128xbf16>
    %cst = arith.constant dense<0.000000e+00> : vector<8x128xf32>
    %2 = tpu.matmul %0, %1, %cst {dimension_numbers = #tpu.dot_dimension_numbers<[1], [0], [0], [1], [0, 0, 1, 1], [], []>} : vector<8x128xbf16>, vector<128x128xbf16>, vector<8x128xf32> -> vector<8x128xf32>
    %c0_3 = arith.constant 0 : index
    %c0_4 = arith.constant 0 : index
    %3 = vector.load %arg3[%c0_3, %c0_4] : memref<1x128xf32, #tpu.memory_space<vmem>>, vector<1x128xf32>
    %4 = vector.broadcast %3 : vector<1x128xf32> to vector<8x128xf32>
    %5 = arith.addf %2, %4 : vector<8x128xf32>
    %cst_5 = arith.constant 5.000000e-01 : f32
    %6 = vector.broadcast %cst_5 : f32 to vector<8x128xf32>
    %7 = arith.mulf %6, %5 : vector<8x128xf32>
    %cst_6 = arith.constant 0.707106769 : f32
    %8 = vector.broadcast %cst_6 : f32 to vector<8x128xf32>
    %9 = arith.mulf %5, %8 : vector<8x128xf32>
    %10 = math.erf %9 : vector<8x128xf32>
    %cst_7 = arith.constant 1.000000e+00 : f32
    %11 = vector.broadcast %cst_7 : f32 to vector<8x128xf32>
    %12 = arith.addf %11, %10 : vector<8x128xf32>
    %13 = arith.mulf %7, %12 : vector<8x128xf32>
    %14 = arith.truncf %13 : vector<8x128xf32> to vector<8x128xbf16>
    %c0_8 = arith.constant 0 : index
    %c0_9 = arith.constant 0 : index
    %15 = vector.load %arg4[%c0_8, %c0_9] : memref<128x128xbf16, #tpu.memory_space<vmem>>, vector<128x128xbf16>
    %cst_10 = arith.constant dense<0.000000e+00> : vector<8x128xf32>
    %16 = tpu.matmul %14, %15, %cst_10 {dimension_numbers = #tpu.dot_dimension_numbers<[1], [0], [0], [1], [0, 0, 1, 1], [], []>} : vector<8x128xbf16>, vector<128x128xbf16>, vector<8x128xf32> -> vector<8x128xf32>
    %c0_11 = arith.constant 0 : index
    %c0_12 = arith.constant 0 : index
    %17 = vector.load %arg5[%c0_11, %c0_12] : memref<1x128xf32, #tpu.memory_space<vmem>>, vector<1x128xf32>
    %18 = vector.broadcast %17 : vector<1x128xf32> to vector<8x128xf32>
    %19 = arith.addf %16, %18 : vector<8x128xf32>
    %c0_13 = arith.constant 0 : index
    %c0_14 = arith.constant 0 : index
    %20 = vector.load %arg6[%c0_13, %c0_14] : memref<8x128xf32, #tpu.memory_space<vmem>>, vector<8x128xf32>
    tpu.vector_store %arg6[%c0_13, %c0_14], %19 {strides = array<i32>} : memref<8x128xf32, #tpu.memory_space<vmem>>, vector<8x128xf32>,
    return
  }
  func.func @transform_0(%arg0: i32) -> (i32, i32) {
    %c0_i32 = arith.constant 0 : i32
    %c0_i32_0 = arith.constant 0 : i32
    return %arg0, %c0_i32 : i32, i32
  }
  func.func @transform_1(%arg0: i32) -> (i32, i32) {
    %c0_i32 = arith.constant 0 : i32
    %c0_i32_0 = arith.constant 0 : i32
    %c0_i32_1 = arith.constant 0 : i32
    return %c0_i32, %c0_i32_0 : i32, i32
  }
  func.func @transform_2(%arg0: i32) -> (i32, i32) {
    %c0_i32 = arith.constant 0 : i32
    %c0_i32_0 = arith.constant 0 : i32
    %c0_i32_1 = arith.constant 0 : i32
    return %c0_i32, %c0_i32_0 : i32, i32
  }
  func.func @transform_3(%arg0: i32) -> (i32, i32) {
    %c0_i32 = arith.constant 0 : i32
    %c0_i32_0 = arith.constant 0 : i32
    %c0_i32_1 = arith.constant 0 : i32
    return %c0_i32, %c0_i32_0 : i32, i32
  }
  func.func @transform_4(%arg0: i32) -> (i32, i32) {
    %c0_i32 = arith.constant 0 : i32
    %c0_i32_0 = arith.constant 0 : i32
    %c0_i32_1 = arith.constant 0 : i32
    return %c0_i32, %c0_i32_0 : i32, i32
  }
  func.func @transform_5(%arg0: i32) -> (i32, i32) {
    %c0_i32 = arith.constant 0 : i32
    %c0_i32_0 = arith.constant 0 : i32
    return %arg0, %c0_i32 : i32, i32
  }
}

</mosaic_0001>

<bundles_post_ra>
// kernel: _mlp_forward_impl.1
= control target key start
LH: loop header
LB: loop body
LE: loop exit
PB: predicated region body
PF: predicated region fallthrough
CT: control target
= control target key end

     0   :  { %s657_s18 = smov 0   ;;  %s736_s0 = inlined_call_operand.vmem [shape: bf16[16,128], index: 0, kind: input, shape index: {}]   ;;  %s737_s1 = inlined_call_operand.vmem [shape: bf16[128,128], index: 1, kind: input, shape index: {}]   ;;  %s738_s2 = inlined_call_operand.vmem [shape: f32[1,128], index: 2, kind: input, shape index: {}]   ;;  %s739_s3 = inlined_call_operand.vmem [shape: bf16[128,128], index: 3, kind: input, shape index: {}]   ;;  %s740_s4 = inlined_call_operand.vmem [shape: f32[1,128], index: 4, kind: input, shape index: {}]   ;;  %s741_s5 = inlined_call_operand.vmem [shape: f32[16,128], index: 5, kind: output, shape index: {}]  }
   0x1 LB: > { %s504_s19 = sadd.s32 4294967295, %s623_s18   ;;  %p508_p0 = scmp.ge.s32.totalorder %s623_s18, 1  ;;  %s623_s18 = sphi %s657_s18, %s15_s18  }
   0x2   : > { %p186_p1 = scmp.lt.s32.totalorder %s623_s18, 3 }
   0x4   : > { %p187_p2 = pnand %p508_p0, %p186_p1 }
   0x5   : > { %p212_p3 = scmp.lt.s32.totalorder (!%p187_p2), %s504_s19, 1 }
   0x6   : > { %190 = sbr.rel (%p187_p2) target bundleno = 460 (0x1cc), region = 40 }
   0xb   : > { %v599_v0 = vld [vmem:[%s737_s1 + $0x38] sm:$0xff]   ;;  %v625_v1 = vmov 0.0   ;;  %v600_v2 = vld [vmem:[%s737_s1 + $0x30] sm:$0xff]   ;;  %vm626_vm0 = vmmov 0   ;;  %v601_v3 = vld [vmem:[%s737_s1 + $0x28] sm:$0xff]   ;;  %s743_s19 = smov (!%p212_p3, %s504_s19), 1 }
   0xc   : > { %549 = vmatprep.subr.bf16.mxu0 %v625_v1  ;;  %569 = vmatprep.subr.bf16.mxu1 %v625_v1  ;;  %v607_v4 = vld [vmem:[%s739_s3 + $0x38] sm:$0xff]   ;;  %v602_v5 = vld [vmem:[%s737_s1 + $0x20] sm:$0xff]   ;;  %v608_v6 = vld [vmem:[%s739_s3 + $0x30] sm:$0xff]   ;;  %s509_s13 = sshll.u32 %s743_s19, 2  ;;  %s510_s10 = sshll.u32 %s743_s19, 3 }
   0xd   : > { %550 = vmatpush3.bf16.msra.mxu0 %v599_v0  ;;  %565 = vmatprep.mubr.msk.bf16.mxu0 %vm626_vm0, %v625_v1  ;;  %v603_v7 = vld [vmem:[%s737_s1 + $0x18] sm:$0xff]   ;;  %v604_v8 = vld [vmem:[%s737_s1 + $0x10] sm:$0xff]   ;;  %v605_v9 = vld [vmem:[%s737_s1 + $0x8] sm:$0xff]   ;;  %s215_s20 = scalar_lea.vmem %s736_s0, %s509_s13  ;;  %s219_s15 = scalar_lea.vmem %s741_s5, %s510_s10 }
   0xe   : > { %551 = vmatprep.subr.bf16.mxu0 %v625_v1  ;;  %585 = vmatprep.mubr.msk.bf16.mxu1 %vm626_vm0, %v625_v1  ;;  %v606_v10 = vld [vmem:[%s737_s1] sm:$0xff]   ;;  %v609_v12 = vld [vmem:[%s739_s3 + $0x28] sm:$0xff]   ;;  %v611_v14 = vld [vmem:[%s739_s3 + $0x18] sm:$0xff]  }
   0xf   : > { %570 = vmatpush3.bf16.msra.mxu1 %v607_v4  ;;  %v221_v11 = vld [vmem:[%s215_s20] sm:$0xf]  ;;  %v612_v15 = vld [vmem:[%s739_s3 + $0x10] sm:$0xff]   ;;  %v613_v16 = vld [vmem:[%s739_s3 + $0x8] sm:$0xff]  }
  0x10   : > { %571 = vmatprep.subr.bf16.mxu1 %v625_v1  ;;  %v610_v13 = vld [vmem:[%s739_s3 + $0x20] sm:$0xff]  }
  0x11   : > { %552 = vmatpush3.bf16.msra.mxu0 %v600_v2  ;;  %v614_v17 = vld [vmem:[%s739_s3] sm:$0xff]  }
  0x12   : > { %553 = vmatprep.subr.bf16.mxu0 %v625_v1  ;;  %v511_v18 = vld [vmem:[%s738_s2] ss:$0 sm:$0xff] }
  0x13   : > { %572 = vmatpush3.bf16.msra.mxu1 %v608_v6  ;;  %v520_v30 = vld [vmem:[%s740_s4] ss:$0 sm:$0xff] }
  0x14   : > { %573 = vmatprep.subr.bf16.mxu1 %v625_v1 }
  0x15   : > { %554 = vmatpush3.bf16.msra.mxu0 %v601_v3 }
  0x16   : > { %555 = vmatprep.subr.bf16.mxu0 %v625_v1 }
  0x17   : > { %574 = vmatpush3.bf16.msra.mxu1 %v609_v12 }
  0x18   : > { %575 = vmatprep.subr.bf16.mxu1 %v625_v1 }
  0x19   : > { %556 = vmatpush3.bf16.msra.mxu0 %v602_v5 }
  0x1a   : > { %557 = vmatprep.subr.bf16.mxu0 %v625_v1 }
  0x1b   : > { %576 = vmatpush3.bf16.msra.mxu1 %v610_v13 }
  0x1c   : > { %577 = vmatprep.subr.bf16.mxu1 %v625_v1 }
  0x1d   : > { %558 = vmatpush3.bf16.msra.mxu0 %v603_v7 }
  0x1e   : > { %559 = vmatprep.subr.bf16.mxu0 %v625_v1 }
  0x1f   : > { %578 = vmatpush3.bf16.msra.mxu1 %v611_v14 }
  0x20   : > { %579 = vmatprep.subr.bf16.mxu1 %v625_v1 }
  0x21   : > { %560 = vmatpush3.bf16.msra.mxu0 %v604_v8 }
  0x22   : > { %561 = vmatprep.subr.bf16.mxu0 %v625_v1 }
  0x23   : > { %580 = vmatpush3.bf16.msra.mxu1 %v612_v15 }
  0x24   : > { %581 = vmatprep.subr.bf16.mxu1 %v625_v1 }
  0x25   : > { %562 = vmatpush3.bf16.msra.mxu0 %v605_v9 }
  0x26   : > { %563 = vmatprep.subr.bf16.mxu0 %v625_v1 }
  0x27   : > { %582 = vmatpush3.bf16.msra.mxu1 %v613_v16 }
  0x28   : > { %583 = vmatprep.subr.bf16.mxu1 %v625_v1 }
  0x29   : > { %564 = vmatpush3.bf16.msra.mxu0 %v606_v10 }
  0x2b   : > { %584 = vmatpush3.bf16.msra.mxu1 %v614_v17 }
  0x2c   : > { %566 = vmatmul.mubr.bf16.vlgmr.msra.gmra.mxu0 %v221_v11 }
  0xec   : > { %v327_v19 = vpop.f32.mrf.mxu0 }
  0xed   : > { %v328_v20 = vadd.f32 %v511_v18, %v327_v19 }
  0xee   : > { %v567_v21 = vpop.f32.mrf.mxu0 }
  0xef   : > { %v334_v22 = vmul.f32 0.70710677, %v328_v20  ;;  %v333_v26 = vmul.f32 0.5, %v328_v20 }
  0xf0   : > { %v330_v23 = vpop.f32.mrf.mxu0 }
  0xf1   : > { %615 = verf.f32 %v334_v22 }
  0xf2   : > { %v568_v24 = vpop.f32.mrf.mxu0 }
  0xfe   : > { %v616_v25 = vpop.eup %615 }
  0xff   : > { %v336_v27 = vadd.f32 1.0, %v616_v25 }
 0x101   : > { %v337_v28 = vmul.f32 %v336_v27, %v333_v26 }
 0x103   : > { %v338_v29 = vpack.c.bf16 %v337_v28, %v337_v28 }
 0x105   : > { %586 = vmatmul.mubr.bf16.vlgmr.msra.gmra.mxu1 %v338_v29 }
 0x1c5   : > { %v444_v31 = vpop.f32.mrf.mxu1 }
 0x1c6   : > { %v445_v32 = vadd.f32 %v520_v30, %v444_v31 }
 0x1c7   : > { %v587_v33 = vpop.f32.mrf.mxu1 }
 0x1c8   : > { %450 = vst [vmem:[%s219_s15] sm:$0xff] %v445_v32 }
 0x1c9   : > { %v447_v34 = vpop.f32.mrf.mxu1 }
 0x1cb   : > { %v588_v35 = vpop.f32.mrf.mxu1 }
 0x1cc PF: > { %s15_s18 = sadd.s32 1, %s623_s18  }
 0x1cd   : > { %p12_p4 = scmp.ge.s32.totalorder %s15_s18, 4  }
 0x1cf   :  { %14 = sbr.rel (!%p12_p4) target bundleno = 1 (0x1), region = 70 }

// kernel: _mlp_forward_impl.1
= control target key start
LH: loop header
LB: loop body
LE: loop exit
PB: predicated region body
PF: predicated region fallthrough
CT: control target
= control target key end

     0   :  { %s657_s18 = smov 0   ;;  %s736_s0 = inlined_call_operand.vmem [shape: bf16[16,128], index: 0, kind: input, shape index: {}]   ;;  %s737_s1 = inlined_call_operand.vmem [shape: bf16[128,128], index: 1, kind: input, shape index: {}]   ;;  %s738_s2 = inlined_call_operand.vmem [shape: f32[1,128], index: 2, kind: input, shape index: {}]   ;;  %s739_s3 = inlined_call_operand.vmem [shape: bf16[128,128], index: 3, kind: input, shape index: {}]   ;;  %s740_s4 = inlined_call_operand.vmem [shape: f32[1,128], index: 4, kind: input, shape index: {}]   ;;  %s741_s5 = inlined_call_operand.vmem [shape: f32[16,128], index: 5, kind: output, shape index: {}]  }
   0x1 LB: > { %s504_s19 = sadd.s32 4294967295, %s623_s18   ;;  %p508_p0 = scmp.ge.s32.totalorder %s623_s18, 1  ;;  %s623_s18 = sphi %s657_s18, %s15_s18  }
   0x2   : > { %p186_p1 = scmp.lt.s32.totalorder %s623_s18, 3 }
   0x4   : > { %p187_p2 = pnand %p508_p0, %p186_p1 }
   0x5   : > { %p212_p3 = scmp.lt.s32.totalorder (!%p187_p2), %s504_s19, 1 }
   0x6   : > { %190 = sbr.rel (%p187_p2) target bundleno = 460 (0x1cc), region = 40 }
   0xb   : > { %v599_v0 = vld [vmem:[%s737_s1 + $0x38] sm:$0xff]   ;;  %v625_v1 = vmov 0.0   ;;  %v600_v2 = vld [vmem:[%s737_s1 + $0x30] sm:$0xff]   ;;  %vm626_vm0 = vmmov 0   ;;  %v601_v3 = vld [vmem:[%s737_s1 + $0x28] sm:$0xff]   ;;  %s743_s19 = smov (!%p212_p3, %s504_s19), 1 }
   0xc   : > { %549 = vmatprep.subr.bf16.mxu0 %v625_v1  ;;  %569 = vmatprep.subr.bf16.mxu1 %v625_v1  ;;  %v607_v4 = vld [vmem:[%s739_s3 + $0x38] sm:$0xff]   ;;  %v602_v5 = vld [vmem:[%s737_s1 + $0x20] sm:$0xff]   ;;  %v608_v6 = vld [vmem:[%s739_s3 + $0x30] sm:$0xff]   ;;  %s509_s13 = sshll.u32 %s743_s19, 2  ;;  %s510_s10 = sshll.u32 %s743_s19, 3 }
   0xd   : > { %550 = vmatpush3.bf16.msra.mxu0 %v599_v0  ;;  %565 = vmatprep.mubr.msk.bf16.mxu0 %vm626_vm0, %v625_v1  ;;  %v603_v7 = vld [vmem:[%s737_s1 + $0x18] sm:$0xff]   ;;  %v604_v8 = vld [vmem:[%s737_s1 + $0x10] sm:$0xff]   ;;  %v605_v9 = vld [vmem:[%s737_s1 + $0x8] sm:$0xff]   ;;  %s215_s20 = scalar_lea.vmem %s736_s0, %s509_s13  ;;  %s219_s15 = scalar_lea.vmem %s741_s5, %s510_s10 }
   0xe   : > { %551 = vmatprep.subr.bf16.mxu0 %v625_v1  ;;  %585 = vmatprep.mubr.msk.bf16.mxu1 %vm626_vm0, %v625_v1  ;;  %v606_v10 = vld [vmem:[%s737_s1] sm:$0xff]   ;;  %v609_v12 = vld [vmem:[%s739_s3 + $0x28] sm:$0xff]   ;;  %v611_v14 = vld [vmem:[%s739_s3 + $0x18] sm:$0xff]  }
   0xf   : > { %570 = vmatpush3.bf16.msra.mxu1 %v607_v4  ;;  %v221_v11 = vld [vmem:[%s215_s20] sm:$0xf]  ;;  %v612_v15 = vld [vmem:[%s739_s3 + $0x10] sm:$0xff]   ;;  %v613_v16 = vld [vmem:[%s739_s3 + $0x8] sm:$0xff]  }
  0x10   : > { %571 = vmatprep.subr.bf16.mxu1 %v625_v1  ;;  %v610_v13 = vld [vmem:[%s739_s3 + $0x20] sm:$0xff]  }
  0x11   : > { %552 = vmatpush3.bf16.msra.mxu0 %v600_v2  ;;  %v614_v17 = vld [vmem:[%s739_s3] sm:$0xff]  }
  0x12   : > { %553 = vmatprep.subr.bf16.mxu0 %v625_v1  ;;  %v511_v18 = vld [vmem:[%s738_s2] ss:$0 sm:$0xff] }
  0x13   : > { %572 = vmatpush3.bf16.msra.mxu1 %v608_v6  ;;  %v520_v30 = vld [vmem:[%s740_s4] ss:$0 sm:$0xff] }
  0x14   : > { %573 = vmatprep.subr.bf16.mxu1 %v625_v1 }
  0x15   : > { %554 = vmatpush3.bf16.msra.mxu0 %v601_v3 }
  0x16   : > { %555 = vmatprep.subr.bf16.mxu0 %v625_v1 }
  0x17   : > { %574 = vmatpush3.bf16.msra.mxu1 %v609_v12 }
  0x18   : > { %575 = vmatprep.subr.bf16.mxu1 %v625_v1 }
  0x19   : > { %556 = vmatpush3.bf16.msra.mxu0 %v602_v5 }
  0x1a   : > { %557 = vmatprep.subr.bf16.mxu0 %v625_v1 }
  0x1b   : > { %576 = vmatpush3.bf16.msra.mxu1 %v610_v13 }
  0x1c   : > { %577 = vmatprep.subr.bf16.mxu1 %v625_v1 }
  0x1d   : > { %558 = vmatpush3.bf16.msra.mxu0 %v603_v7 }
  0x1e   : > { %559 = vmatprep.subr.bf16.mxu0 %v625_v1 }
  0x1f   : > { %578 = vmatpush3.bf16.msra.mxu1 %v611_v14 }
  0x20   : > { %579 = vmatprep.subr.bf16.mxu1 %v625_v1 }
  0x21   : > { %560 = vmatpush3.bf16.msra.mxu0 %v604_v8 }
  0x22   : > { %561 = vmatprep.subr.bf16.mxu0 %v625_v1 }
  0x23   : > { %580 = vmatpush3.bf16.msra.mxu1 %v612_v15 }
  0x24   : > { %581 = vmatprep.subr.bf16.mxu1 %v625_v1 }
  0x25   : > { %562 = vmatpush3.bf16.msra.mxu0 %v605_v9 }
  0x26   : > { %563 = vmatprep.subr.bf16.mxu0 %v625_v1 }
  0x27   : > { %582 = vmatpush3.bf16.msra.mxu1 %v613_v16 }
  0x28   : > { %583 = vmatprep.subr.bf16.mxu1 %v625_v1 }
  0x29   : > { %564 = vmatpush3.bf16.msra.mxu0 %v606_v10 }
  0x2b   : > { %584 = vmatpush3.bf16.msra.mxu1 %v614_v17 }
  0x2c   : > { %566 = vmatmul.mubr.bf16.vlgmr.msra.gmra.mxu0 %v221_v11 }
  0xec   : > { %v327_v19 = vpop.f32.mrf.mxu0 }
  0xed   : > { %v328_v20 = vadd.f32 %v511_v18, %v327_v19 }
  0xee   : > { %v567_v21 = vpop.f32.mrf.mxu0 }
  0xef   : > { %v334_v22 = vmul.f32 0.70710677, %v328_v20  ;;  %v333_v26 = vmul.f32 0.5, %v328_v20 }
  0xf0   : > { %v330_v23 = vpop.f32.mrf.mxu0 }
  0xf1   : > { %615 = verf.f32 %v334_v22 }
  0xf2   : > { %v568_v24 = vpop.f32.mrf.mxu0 }
  0xfe   : > { %v616_v25 = vpop.eup %615 }
  0xff   : > { %v336_v27 = vadd.f32 1.0, %v616_v25 }
 0x101   : > { %v337_v28 = vmul.f32 %v336_v27, %v333_v26 }
 0x103   : > { %v338_v29 = vpack.c.bf16 %v337_v28, %v337_v28 }
 0x105   : > { %586 = vmatmul.mubr.bf16.vlgmr.msra.gmra.mxu1 %v338_v29 }
 0x1c5   : > { %v444_v31 = vpop.f32.mrf.mxu1 }
 0x1c6   : > { %v445_v32 = vadd.f32 %v520_v30, %v444_v31 }
 0x1c7   : > { %v587_v33 = vpop.f32.mrf.mxu1 }
 0x1c8   : > { %450 = vst [vmem:[%s219_s15] sm:$0xff] %v445_v32 }
 0x1c9   : > { %v447_v34 = vpop.f32.mrf.mxu1 }
 0x1cb   : > { %v588_v35 = vpop.f32.mrf.mxu1 }
 0x1cc PF: > { %s15_s18 = sadd.s32 1, %s623_s18  }
 0x1cd   : > { %p12_p4 = scmp.ge.s32.totalorder %s15_s18, 4  }
 0x1cf   :  { %14 = sbr.rel (!%p12_p4) target bundleno = 1 (0x1), region = 70 }

</bundles_post_ra>
